<compile_context>
chip_gen: v7x
topology: tpu7x:2x2x1
jax: 0.10.0
libtpu: 0.0.40
codegen_flags: <defaults>
</compile_context>

<pallas_src>
import jax
import jax.numpy as jnp
from jax import lax
from jax.experimental import pallas as pl
from jax.experimental.pallas import tpu as pltpu

NUM_EMBEDDINGS = 100
EMB_DIM = 16
OUT_DIM = 8


def hybrid_model_kernel(idx_ref, start_ref, end_ref, table_ref, b_ref, out_ref):
    # idx_ref:   (N, 1) int32   indices into the embedding table
    # start_ref: (B, 1) int32   bag start offsets
    # end_ref:   (B, 1) int32   bag end offsets (exclusive)
    # table_ref: (NUM_EMBEDDINGS, OUT_DIM) bf16   pre-fused table (emb_table @ W^T)
    # b_ref:     (1, OUT_DIM) f32
    # out_ref:   (B, OUT_DIM) f32
    n = idx_ref.shape[0]
    b = start_ref.shape[0]

    idx = idx_ref[...]                     # (N, 1)
    starts = start_ref[...]                # (B, 1)
    ends = end_ref[...]                    # (B, 1)

    # --- embedding lookup (already fused with Linear) as one-hot matmul (MXU, bf16) ---
    emb_ids = lax.broadcasted_iota(jnp.int32, (n, NUM_EMBEDDINGS), 1)   # (N, NUM_EMB)
    onehot = (emb_ids == idx).astype(jnp.bfloat16)                      # exact 0/1 in bf16
    gathered = jnp.dot(onehot, table_ref[...],
                       preferred_element_type=jnp.float32)              # (N, OUT_DIM) f32

    # --- per-bag mean pooling: counts from scalar ranges (VPU), 1/x on EUP, no XLU ---
    counts = jnp.maximum((ends - starts).astype(jnp.float32), 1.0)      # (B, 1)
    inv_counts = pl.reciprocal(counts, approx=True)                     # (B, 1)
    pos = lax.broadcasted_iota(jnp.int32, (b, n), 1)                    # (B, N)
    seg = jnp.logical_and(pos >= starts, pos < ends).astype(jnp.float32)
    seg_scaled = (seg * inv_counts).astype(jnp.bfloat16)                # mean folded into mask

    pooled = jnp.dot(seg_scaled, gathered.astype(jnp.bfloat16),
                     preferred_element_type=jnp.float32)                # (B, OUT_DIM)

    # --- dense bias add ---
    out_ref[...] = pooled + b_ref[...]


def hybrid_model_forward(indices, offsets, emb_table, fc_weight, fc_bias):
    """indices: int32 [N]; offsets: int32 [B]; emb_table: [NUM_EMB, EMB_DIM];
    fc_weight: [OUT_DIM, EMB_DIM] (PyTorch layout); fc_bias: [OUT_DIM]."""
    n = indices.shape[0]
    batch = offsets.shape[0]

    # Glue: per-bag [start, end) ranges (EmbeddingBag without include_last_offset).
    starts = offsets.astype(jnp.int32)
    ends = jnp.concatenate([starts[1:], jnp.array([n], jnp.int32)])

    idx_2d = indices.astype(jnp.int32).reshape(n, 1)
    start_2d = starts.reshape(batch, 1)
    end_2d = ends.reshape(batch, 1)

    # Pre-fuse the Linear into the table: (100, 16) @ (16, 8) -> (100, 8), cast to bf16
    # for the MXU. Masks inside the kernel are exact in bf16; accumulation stays f32.
    table_fused = jnp.dot(emb_table.astype(jnp.float32),
                          fc_weight.astype(jnp.float32).T).astype(jnp.bfloat16)
    b_2d = fc_bias.astype(jnp.float32).reshape(1, OUT_DIM)

    vmem = pl.BlockSpec(memory_space=pltpu.MemorySpace.VMEM)
    return pl.pallas_call(
        hybrid_model_kernel,
        out_shape=jax.ShapeDtypeStruct((batch, OUT_DIM), jnp.float32),
        in_specs=[vmem] * 5,
        out_specs=vmem,
    )(idx_2d, start_2d, end_2d, table_fused, b_2d)


def _reference(indices, offsets, emb_table, fc_weight, fc_bias):
    n = indices.shape[0]
    starts = offsets
    ends = jnp.concatenate([starts[1:], jnp.array([n], jnp.int32)])
    gathered = emb_table[indices]                                     # (N, EMB_DIM)
    pos = jnp.arange(n)[None, :]
    seg = ((pos >= starts[:, None]) & (pos < ends[:, None])).astype(jnp.float32)
    counts = jnp.maximum(seg.sum(axis=1, keepdims=True), 1.0)
    pooled = seg @ gathered / counts
    return pooled @ fc_weight.T + fc_bias


if __name__ == "__main__":
    key = jax.random.PRNGKey(0)
    k_tbl, k_w, k_b, k_idx = jax.random.split(key, 4)

    batch = 8                      # number of bags
    per_bag = 4
    n_indices = batch * per_bag    # 32 total indices

    # Deterministic "parameter server" embedding table and DDP Linear(16, 8) params.
    emb_table = jax.random.normal(k_tbl, (NUM_EMBEDDINGS, EMB_DIM), jnp.float32) * 0.1
    fc_weight = jax.random.normal(k_w, (OUT_DIM, EMB_DIM), jnp.float32) * 0.1
    fc_bias = jax.random.normal(k_b, (OUT_DIM,), jnp.float32) * 0.1

    indices = jax.random.randint(k_idx, (n_indices,), 0, NUM_EMBEDDINGS, jnp.int32)
    offsets = jnp.arange(0, n_indices, per_bag, dtype=jnp.int32)   # [0, 4, 8, ..., 28]

    out = hybrid_model_forward(indices, offsets, emb_table, fc_weight, fc_bias)
    out = jax.block_until_ready(out)

    ref = _reference(indices, offsets, emb_table, fc_weight, fc_bias)
    assert out.shape == (batch, OUT_DIM)
    # Tolerance loosened vs. the pure-f32 version: bf16 fused-table values and the
    # approx EUP reciprocal introduce ~1e-3-scale relative error; masks are exact.
    assert jnp.allclose(out, ref, atol=1e-2, rtol=1e-2), "mismatch vs reference"

    print("KERNEL_OK")
</pallas_src>

<mosaic_0001>
module attributes {stable_mosaic.version = 11 : i64} {
  func.func @hybrid_model_kernel(%arg0: memref<32x1xi32, #tpu.memory_space<vmem>>, %arg1: memref<8x1xi32, #tpu.memory_space<vmem>>, %arg2: memref<8x1xi32, #tpu.memory_space<vmem>>, %arg3: memref<100x8xbf16, #tpu.memory_space<vmem>>, %arg4: memref<1x8xf32, #tpu.memory_space<vmem>>, %arg5: memref<8x8xf32, #tpu.memory_space<vmem>>) attributes {dimension_semantics = [], scalar_prefetch = 0 : i64, scratch_operands = 0 : i64, tpu.core_type = #tpu.core_type<tc>} {
    %c0 = arith.constant 0 : index
    %c0_0 = arith.constant 0 : index
    %0 = vector.load %arg0[%c0, %c0_0] : memref<32x1xi32, #tpu.memory_space<vmem>>, vector<32x1xi32>
    %c0_1 = arith.constant 0 : index
    %c0_2 = arith.constant 0 : index
    %1 = vector.load %arg1[%c0_1, %c0_2] : memref<8x1xi32, #tpu.memory_space<vmem>>, vector<8x1xi32>
    %c0_3 = arith.constant 0 : index
    %c0_4 = arith.constant 0 : index
    %2 = vector.load %arg2[%c0_3, %c0_4] : memref<8x1xi32, #tpu.memory_space<vmem>>, vector<8x1xi32>
    %3 = tpu.iota {dimensions = array<i32: 1>} : vector<32x100xi32>
    %4 = vector.broadcast %0 : vector<32x1xi32> to vector<32x100xi32>
    %5 = arith.cmpi eq, %3, %4 : vector<32x100xi32>
    %6 = arith.extui %5 : vector<32x100xi1> to vector<32x100xi32>
    %7 = arith.sitofp %6 : vector<32x100xi32> to vector<32x100xf32>
    %8 = arith.truncf %7 : vector<32x100xf32> to vector<32x100xbf16>
    %c0_5 = arith.constant 0 : index
    %c0_6 = arith.constant 0 : index
    %9 = vector.load %arg3[%c0_5, %c0_6] : memref<100x8xbf16, #tpu.memory_space<vmem>>, vector<100x8xbf16>
    %cst = arith.constant dense<0.000000e+00> : vector<32x8xf32>
    %10 = tpu.matmul %8, %9, %cst {dimension_numbers = #tpu.dot_dimension_numbers<[1], [0], [0], [1], [0, 0, 1, 1], [], []>} : vector<32x100xbf16>, vector<100x8xbf16>, vector<32x8xf32> -> vector<32x8xf32>
    %11 = arith.subi %2, %1 : vector<8x1xi32>
    %12 = arith.sitofp %11 : vector<8x1xi32> to vector<8x1xf32>
    %cst_7 = arith.constant 1.000000e+00 : f32
    %13 = vector.broadcast %cst_7 : f32 to vector<8x1xf32>
    %14 = arith.maximumf %12, %13 : vector<8x1xf32>
    %15 = tpu.reciprocal %14 {approx = true} : vector<8x1xf32> -> vector<8x1xf32>
    %16 = tpu.iota {dimensions = array<i32: 1>} : vector<8x32xi32>
    %17 = vector.broadcast %1 : vector<8x1xi32> to vector<8x32xi32>
    %18 = arith.cmpi sge, %16, %17 : vector<8x32xi32>
    %19 = vector.broadcast %2 : vector<8x1xi32> to vector<8x32xi32>
    %20 = arith.cmpi slt, %16, %19 : vector<8x32xi32>
    %21 = arith.andi %18, %20 : vector<8x32xi1>
    %22 = arith.extui %21 : vector<8x32xi1> to vector<8x32xi32>
    %23 = arith.sitofp %22 : vector<8x32xi32> to vector<8x32xf32>
    %24 = vector.broadcast %15 : vector<8x1xf32> to vector<8x32xf32>
    %25 = arith.mulf %23, %24 : vector<8x32xf32>
    %26 = arith.truncf %25 : vector<8x32xf32> to vector<8x32xbf16>
    %27 = arith.truncf %10 : vector<32x8xf32> to vector<32x8xbf16>
    %cst_8 = arith.constant dense<0.000000e+00> : vector<8x8xf32>
    %28 = tpu.matmul %26, %27, %cst_8 {dimension_numbers = #tpu.dot_dimension_numbers<[1], [0], [0], [1], [0, 0, 1, 1], [], []>} : vector<8x32xbf16>, vector<32x8xbf16>, vector<8x8xf32> -> vector<8x8xf32>
    %c0_9 = arith.constant 0 : index
    %c0_10 = arith.constant 0 : index
    %29 = vector.load %arg4[%c0_9, %c0_10] : memref<1x8xf32, #tpu.memory_space<vmem>>, vector<1x8xf32>
    %30 = vector.broadcast %29 : vector<1x8xf32> to vector<8x8xf32>
    %31 = arith.addf %28, %30 : vector<8x8xf32>
    %c0_11 = arith.constant 0 : index
    %c0_12 = arith.constant 0 : index
    %32 = vector.load %arg5[%c0_11, %c0_12] : memref<8x8xf32, #tpu.memory_space<vmem>>, vector<8x8xf32>
    tpu.vector_store %arg5[%c0_11, %c0_12], %31 {strides = array<i32>} : memref<8x8xf32, #tpu.memory_space<vmem>>, vector<8x8xf32>,
    return
  }
}

</mosaic_0001>

<bundles_post_ra>
// kernel: tpu_custom_call.1
= control target key start
LH: loop header
LB: loop body
LE: loop exit
PB: predicated region body
PF: predicated region fallthrough
CT: control target
= control target key end

     0   :  { %v353_v2 = vmov 0   ;;  %v354_v10 = vmov 0.0   ;;  %s449_s0 = inlined_call_operand.vmem [shape: s32[32,1], index: 0, kind: input, shape index: {}]   ;;  %s450_s1 = inlined_call_operand.vmem [shape: s32[8,1], index: 1, kind: input, shape index: {}]   ;;  %s451_s2 = inlined_call_operand.vmem [shape: s32[8,1], index: 2, kind: input, shape index: {}]   ;;  %s452_s3 = inlined_call_operand.vmem [shape: bf16[100,8], index: 3, kind: input, shape index: {}]   ;;  %s453_s4 = inlined_call_operand.vmem [shape: f32[1,8], index: 4, kind: input, shape index: {}]   ;;  %s454_s5 = inlined_call_operand.hbm [shape: f32[8,8], index: 5, kind: output, shape index: {}]  }
   0x1   :  { %v24_v0 = vld [vmem:[%s449_s0 + $0x10] sm:$0xff]  ;;  %v22_v1 = vld [vmem:[%s449_s0] sm:$0xff]  ;;  %319 = vset.pattern.permute.xlu1 %v353_v2  ;;  %318 = vset.pattern.permute.xlu0 %v353_v2  ;;  %v25_v3 = vld [vmem:[%s449_s0 + $0x18] sm:$0xff] }
   0x2   :  { %v23_v4 = vld [vmem:[%s449_s0 + $0x8] sm:$0xff]  ;;  %v27_v5 = vld [vmem:[%s451_s2] sm:$0xff]  ;;  %37 = vperm.xlu1 %319, %v24_v0   ;;  %31 = vperm.xlu0 %318, %v22_v1   ;;  %v322_v13 = vld [vmem:[%s452_s3 + $0x10] sm:$0xff]  }
   0x3   :  { %v26_v6 = vld [vmem:[%s450_s1] sm:$0xff]  ;;  %v321_v9 = vld [vmem:[%s452_s3 + $0x8] sm:$0xff]   ;;  %305 = vmatprep.subr.bf16.mxu1 %v354_v10 }
   0x4   :  { %v168_v7 = vsub.s32 %v27_v5, %v26_v6  ;;  %v320_v8 = vld [vmem:[%s452_s3] sm:$0xff]  }
   0x5   :  { %287 = vmatprep.subr.bf16.mxu0 %v320_v8 }
   0x6   :  { %v169_v11 = vcvt.s32.f32 %v168_v7  ;;  %288 = vmatpush3.bf16.msra.mxu0 %v320_v8  ;;  %40 = vperm.xlu1 %319, %v25_v3  }
   0x7   :  { %34 = vperm.xlu0 %318, %v23_v4   ;;  %289 = vmatprep.subr.bf16.mxu0 %v321_v9 }
   0x8   :  { %v170_v12 = vmax.f32 %v169_v11, 1.0 }
   0xa   :  { %327 = vrcp.f32 %v170_v12  ;;  %290 = vmatpush3.bf16.msra.mxu0 %v321_v9 }
   0xb   :  { %10 = vsyncpa [#allocation3], 0  ;;  %177 = vperm.xlu1 %319, %v27_v5   ;;  %173 = vperm.xlu0 %318, %v26_v6   ;;  %v323_v14 = vld [vmem:[%s452_s3 + $0x18] sm:$0xff]   ;;  %v324_v15 = vld [vmem:[%s452_s3 + $0x20] sm:$0xff]   ;;  %vm115_vm0 = vcmask 1041408   ;;  %v28_v20 = vlaneseq  ;;  %vm108_vm5 = vcmask 818176  }
   0xc   :  { %291 = vmatprep.subr.bf16.mxu0 %v322_v13  ;;  %v325_v17 = vld [vmem:[%s452_s3 + $0x28] sm:$0xff]   ;;  %v326_v18 = vld [vmem:[%s452_s3 + $0x30] ss:$0 sps:$4 sm:$0x33]   ;;  %vm355_vm6 = vmmov 0   ;;  %vm199_vm10 = vcmask 261120  }
   0xd   :  { %v117_v19 = vsel %vm115_vm0, %v326_v18, 0  ;;  %v29_v21 = vand.u32 127, %v28_v20  ;;  %309 = vmatprep.mubr.msk.bf16.mxu1 %vm355_vm6, %v354_v10  ;;  %v273_v44 = vld [vmem:[%s453_s4] ss:$0 sm:$0xff]  ;;  %s356_s17 = smov [#allocation2]   ;;  %vm243_vm11 = vcmask 64512  }
   0xe   :  { %292 = vmatpush3.bf16.msra.mxu0 %v322_v13  ;;  %s251_s18 = sshll.u32 %s356_s17, 4  ;;  %s252_s18 = int_to_ptr.vmem [resolvable:$true] %s251_s18 }
   0xf   :  { %293 = vmatprep.subr.bf16.mxu0 %v323_v14  ;;  %s329_s19 = scalar_lea.vmem %s252_s18, 128  ;;  %p334_p1 = scmp.lt.s32.totalorder %s252_s18, %s252_s18 }
  0x10   :  { %p330_p0 = scmp.ne.s32.totalorder %s252_s18, %s329_s19  ;;  %p335_p2 = scmp.lt.s32.totalorder %s329_s19, %s329_s19 }
  0x12   :  { %294 = vmatpush3.bf16.msra.mxu0 %v323_v14  ;;  %p336_p3 = por %p335_p2, %p334_p1 }
  0x13   :  { %295 = vmatprep.subr.bf16.mxu0 %v324_v15 }
  0x14   :  { %v328_v16 = vpop.eup %327  ;;  %p337_p4 = pnand %p336_p3, %p330_p0 }
  0x15   :  { %185 = vperm.xlu0 %318, %v328_v16  }
  0x16   :  { %296 = vmatpush3.bf16.msra.mxu0 %v324_v15 }
  0x17   :  { %297 = vmatprep.subr.bf16.mxu0 %v325_v17 }
  0x1a   :  { %298 = vmatpush3.bf16.msra.mxu0 %v325_v17 }
  0x1b   :  { %313 = vmatprep.subr.msk.bf16.mxu0 %vm115_vm0, %v326_v18 }
  0x1e   :  { %300 = vmatpush3.bf16.msra.mxu0 %v117_v19 }
  0x81   :  { %v38_v22 = vpop.permute.xlu1 %37  ;;  %v32_v23 = vpop.permute.xlu0 %31 }
  0x82   :  { %vm44_vm1 = vcmp.eq.s32.totalorder %v29_v21, %v38_v22  ;;  %vm42_vm2 = vcmp.eq.s32.totalorder %v29_v21, %v32_v23 }
  0x83   :  { %v261_v26 = vsel %vm44_vm1, 1.0, %v354_v10  ;;  %v259_v27 = vsel %vm42_vm2, 1.0, %v354_v10 }
  0x85   :  { %v41_v24 = vpop.permute.xlu1 %40 }
  0x86   :  { %v35_v25 = vpop.permute.xlu0 %34  ;;  %vm45_vm3 = vcmp.eq.s32.totalorder %v29_v21, %v41_v24 }
  0x87   :  { %vm43_vm4 = vcmp.eq.s32.totalorder %v29_v21, %v35_v25  ;;  %v262_v28 = vsel %vm45_vm3, 1.0, %v354_v10 }
  0x88   :  { %v260_v29 = vsel %vm43_vm4, 1.0, %v354_v10  ;;  %v55_v30 = vpack.c.bf16 %v262_v28, %v261_v26 }
  0x89   :  { %v54_v31 = vpack.c.bf16 %v260_v29, %v259_v27 }
  0x8a   :  { %v178_v32 = vpop.permute.xlu1 %177  ;;  %v174_v33 = vpop.permute.xlu0 %173 }
  0x8b   :  { %301 = vmatprep.mubr.msk.bf16.mxu0 %vm108_vm5, %v54_v31  ;;  %vm179_vm7 = vcmp.lt.s32.totalorder %v29_v21, %v178_v32  ;;  %vm175_vm8 = vcmp.ge.s32.totalorder %v29_v21, %v174_v33 }
  0x8c   :  { %302 = vmatmul.mubr.msk.bf16.vlgmr.msra.gmra.mrb[0].mxu0 %vm108_vm5, %v55_v30  ;;  %vm180_vm9 = vmand %vm175_vm8, %vm179_vm7 }
  0x8d   :  { %v272_v41 = vsel %vm180_vm9, 1.0, %v354_v10 }
  0x94   :  { %v186_v39 = vpop.permute.xlu0 %185 }
  0x95   :  { %v188_v42 = vmul.f32 %v272_v41, %v186_v39 }
  0x97   :  { %v189_v43 = vpack.c.bf16 %v188_v42, %v188_v42 }
 0x15f   :  { %v303_v34 = vpop.f32.mrb[0].mxu0 }
 0x160   :  { %v153_v35 = vpop.f32.mrb[1].mxu0 }
 0x161   :  { %v304_v36 = vpop.f32.mrb[2].mxu0 }
 0x162   :  { %v191_v37 = vpack.c.bf16 %v304_v36, %v303_v34  ;;  %v156_v38 = vpop.f32.mrb[3].mxu0 }
 0x163   :  { %v190_v40 = vpack.c.bf16 %v156_v38, %v153_v35 }
 0x165   :  { %306 = vmatpush3.bf16.msra.mxu1 %v190_v40 }
 0x166   :  { %307 = vmatprep.subr.bf16.mxu1 %v354_v10 }
 0x169   :  { %308 = vmatpush3.bf16.msra.mxu1 %v191_v37 }
 0x16c   :  { %310 = vmatmul.mubr.msk.bf16.vlgmr.msra.gmra.mrb[0].mxu1 %vm199_vm10, %v189_v43 }
 0x23f   :  { %v237_v45 = vpop.f32.mrb[0].mxu1 }
 0x240   :  { %v238_v46 = vadd.f32 %v273_v44, %v237_v45  ;;  %v311_v47 = vpop.f32.mrb[1].mxu1 }
 0x241   :  { %v240_v48 = vpop.f32.mrb[2].mxu1 }
 0x242   :  { %v312_v49 = vpop.f32.mrb[3].mxu1  ;;  %244 = vst.msk [vmem:[#allocation2] sm:$0xff] %vm243_vm11, %v238_v46 }
 0x243   :  { %340 = shalt.err (!%p337_p4)
}
 0x244   :  { %s341_s4 = scalar_lea.hbm %s454_s5, 128 }
 0x245   :  { %p342_p5 = scmp.ne.s32.totalorder %s454_s5, %s341_s4  ;;  %p345_p6 = scmp.lt.u32.totalorder %s341_s4, %s454_s5 }
 0x247   :  { %p347_p7 = pnand %p345_p6, %p342_p5 }
 0x249   :  { %350 = shalt.err (!%p347_p7)
}
 0x24a   :  { %254 = dma.vmem_to_hbm [thread:$0]  %s252_s18, 128, %s454_s5, [#allocation3]  }
 0x24b   :  { %351 = dma.done.wait [#allocation3], 128  }
 0x24c   :  { %352 = vsyncadd [#allocation3], 4294967168 }
 0x24d   :  { %258 = vsyncpa [#allocation3], 1 }

</bundles_post_ra>
